<compile_context>
chip_gen: v5e
topology: v5e:2x2
jax: 0.10.0
libtpu: 0.0.40
codegen_flags: <defaults>
</compile_context>

<pallas_src>
import functools

import jax
import jax.numpy as jnp
from jax.experimental import pallas as pl
from jax.experimental.pallas import tpu as pltpu


def _round_up(x, m):
    return ((x + m - 1) // m) * m


def _causal_dwconv_kernel(K, tT, D, HPAD, carry_history,
                          x_ref, dww_ref, pww_ref, beff_ref, o_ref, hist_ref):
    # x_ref   : (1, tT, D)   current (unpadded) time tile
    # dww_ref : (K, D)       depthwise weights, dww[k, d] = torch_w[d, 0, k]
    # pww_ref : (D, D)       pointwise weights, pww[d_in, d_out]
    # beff_ref: (1, D)       fused bias = dw_bias @ pww + pw_bias
    # o_ref   : (1, tT, D)
    # hist_ref: (HPAD, D)    small VMEM scratch; its last K-1 rows hold the
    #                        previous tile's last K-1 time rows (causal history)
    i = pl.program_id(1)  # time-tile index (sequential, innermost)

    x_raw = x_ref[0]                      # (tT, D) loaded once
    x32 = x_raw.astype(jnp.float32)       # single up-cast per tile

    if K > 1:
        @pl.when(i == 0)
        def _init_history():
            # Causal boundary: zero history at the start of every sequence.
            # NOTE: relies on batch-outer / time-inner traversal (Pallas
            # lexicographic order; megacore sharding of the "parallel" batch
            # axis keeps each core's traversal contiguous per batch row).
            hist_ref[...] = jnp.zeros((HPAD, D), dtype=hist_ref.dtype)

        # Causally padded tile built in registers: HPAD history rows (8-row
        # aligned concat) followed by the current tile.
        xpad = jnp.concatenate([hist_ref[...].astype(jnp.float32), x32], axis=0)
        off = HPAD - (K - 1)
        # Depthwise causal conv: acc[t, d] = sum_k w[k, d] * xpad[off + k + t, d]
        acc = dww_ref[K - 1:K, :].astype(jnp.float32) * x32     # k = K-1: no shift
        for k in range(K - 1):
            acc = acc + (dww_ref[k:k + 1, :].astype(jnp.float32)
                         * xpad[off + k:off + k + tT, :])
        if carry_history:
            # Carry this tile's last K-1 rows as history for the next tile.
            hist_ref[off:, :] = x_raw[tT - (K - 1):, :]
    else:
        acc = dww_ref[0:1, :].astype(jnp.float32) * x32

    # Pointwise 1x1 conv == matmul over channels (MXU path). Feed the
    # parameter dtype directly (bf16 stays bf16), accumulate in f32.
    w_pw = pww_ref[...]
    out = jnp.dot(acc.astype(w_pw.dtype), w_pw,
                  preferred_element_type=jnp.float32)
    out = out + beff_ref[...].astype(jnp.float32)
    o_ref[0] = out.astype(o_ref.dtype)


def _vmem_capacity_bytes():
    try:
        cap = int(getattr(pltpu.get_tpu_info(), "vmem_capacity_bytes", 0))
        if cap > 0:
            return cap
    except Exception:
        pass
    return 64 << 20  # conservative default (v7x-sized per-core VMEM)


def _choose_time_tile(T, D, x_itemsize, weight_bytes, hist_bytes, budget):
    """Largest 'nice' time tile keeping (2x in + 2x out buffers + weights +
    history scratch) under the VMEM budget."""
    per_row = 4 * D * x_itemsize                       # 2 in bufs + 2 out bufs
    avail = budget - 2 * weight_bytes - hist_bytes     # weights 2x for safety
    cap_rows = max(8, avail // per_row)
    if T <= cap_rows:
        return _round_up(T, 8)                         # whole sequence, one tile
    if cap_rows >= 128:
        return int(min((cap_rows // 128) * 128, 1024)) # MXU-friendly M dim
    return int(max(8, (cap_rows // 8) * 8))


def causal_depthwise_conv1d(x, dw_weight, dw_bias, pw_weight, pw_bias,
                            kernel_size, time_tile=None):
    """x: (B, T, D). dw_weight: (D,1,K), dw_bias: (D,), pw_weight: (D,D,1),
    pw_bias: (D,). Returns (B, T, D), matching the PyTorch module's forward."""
    B, T, D = x.shape
    K = int(kernel_size)
    assert dw_weight.shape == (D, 1, K) and pw_weight.shape == (D, D, 1)

    # --- parameter glue (torch layouts -> kernel layouts) -------------------
    dww = jnp.transpose(dw_weight[:, 0, :], (1, 0))      # (K, D)
    pww = jnp.transpose(pw_weight[:, :, 0], (1, 0))      # (D_in, D_out)
    # Fold the depthwise bias through the pointwise conv:
    #   (h + dwb) @ W + pwb == h @ W + (dwb @ W + pwb)
    beff = dw_bias[None, :] @ pww + pw_bias[None, :]     # (1, D)

    # --- lane-align the channel dim (D lives on the lane axis) --------------
    Dp = _round_up(D, 128)
    if Dp != D:
        dww = jnp.pad(dww, ((0, 0), (0, Dp - D)))
        pww = jnp.pad(pww, ((0, Dp - D), (0, Dp - D)))
        beff = jnp.pad(beff, ((0, 0), (0, Dp - D)))

    # --- time tiling sized from this generation's VMEM ----------------------
    HPAD = max(8, _round_up(K - 1, 8))
    w_itemsize = jnp.dtype(pww.dtype).itemsize
    weight_bytes = (dww.size + pww.size + beff.size) * w_itemsize
    hist_bytes = HPAD * Dp * x.dtype.itemsize
    vmem_cap = _vmem_capacity_bytes()
    budget = max(24 << 20, min(int(vmem_cap * 0.5), 48 << 20))
    if time_tile is None:
        tT = _choose_time_tile(T, Dp, x.dtype.itemsize, weight_bytes,
                               hist_bytes, budget)
    else:
        tT = _round_up(int(time_tile), 8)
    Tp = _round_up(T, tT)
    nT = Tp // tT
    if nT > 1:
        assert tT >= K - 1, "time tile must cover the causal history"

    xp = x
    if Tp != T or Dp != D:
        xp = jnp.pad(x, ((0, 0), (0, Tp - T), (0, Dp - D)))

    kernel = functools.partial(_causal_dwconv_kernel, K, tT, Dp, HPAD, nT > 1)

    bytes_io = (xp.size + B * Tp * Dp) * x.dtype.itemsize
    cost = pl.CostEstimate(
        flops=2 * B * Tp * Dp * Dp + 2 * B * Tp * Dp * K,
        transcendentals=0,
        bytes_accessed=bytes_io + weight_bytes,
    )
    vmem_limit = int(max(32 << 20, min(vmem_cap, 128 << 20) - (8 << 20)))

    # TODO(synk): when B < number of TensorCores (e.g. B == 1 on v7x), add a
    # leading parallel axis splitting T into per-core segments (recomputing the
    # K-1 overlap rows) so both cores get work.
    def call(weight_pipeline_mode):
        wkw = {} if weight_pipeline_mode is None else dict(
            pipeline_mode=weight_pipeline_mode)
        grid_spec = pltpu.PrefetchScalarGridSpec(
            num_scalar_prefetch=0,
            grid=(B, nT),                                # time innermost / sequential
            in_specs=[
                pl.BlockSpec((1, tT, Dp), lambda b, i: (b, i, 0)),
                pl.BlockSpec((K, Dp), lambda b, i: (0, 0), **wkw),
                pl.BlockSpec((Dp, Dp), lambda b, i: (0, 0), **wkw),
                pl.BlockSpec((1, Dp), lambda b, i: (0, 0), **wkw),
            ],
            out_specs=pl.BlockSpec((1, tT, Dp), lambda b, i: (b, i, 0)),
            scratch_shapes=[pltpu.VMEM((HPAD, Dp), x.dtype)],
        )
        return pl.pallas_call(
            kernel,
            out_shape=jax.ShapeDtypeStruct((B, Tp, Dp), x.dtype),
            grid_spec=grid_spec,
            compiler_params=pltpu.CompilerParams(
                # Batch is parallel across cores; the time axis must stay
                # sequential ("arbitrary") because of the causal history carry.
                dimension_semantics=("parallel", "arbitrary"),
                vmem_limit_bytes=vmem_limit,
            ),
            cost_estimate=cost,
        )(xp, dww, pww, beff)

    try:
        # Resident weights single-buffered (constant index map -> no need to
        # double-buffer; halves pww's VMEM footprint for large D).
        out = call(pl.Buffered(1))
    except Exception:
        out = call(None)   # fallback: default buffering

    if Tp != T or Dp != D:
        out = out[:, :T, :D]
    return out


def _reference(x, dw_weight, dw_bias, pw_weight, pw_bias, K):
    """Plain-JAX reference matching the PyTorch forward exactly."""
    B, T, D = x.shape
    xpd = jnp.pad(x, ((0, 0), (K - 1, 0), (0, 0)))
    h = jnp.zeros((B, T, D), jnp.float32)
    for k in range(K):
        h = h + xpd[:, k:k + T, :].astype(jnp.float32) * dw_weight[:, 0, k][None, None, :]
    h = h + dw_bias[None, None, :]
    out = jnp.einsum("btd,od->bto", h, pw_weight[:, :, 0]) + pw_bias[None, None, :]
    return out


if __name__ == "__main__":
    root = jax.random.PRNGKey(0)

    def make_params(key, D, K):
        k1, k2, k3, k4 = jax.random.split(key, 4)
        dw_weight = jax.random.normal(k1, (D, 1, K), dtype=jnp.float32) * 0.1
        dw_bias = jax.random.normal(k2, (D,), dtype=jnp.float32) * 0.1
        pw_weight = jax.random.normal(k3, (D, D, 1), dtype=jnp.float32) * 0.1
        pw_bias = jax.random.normal(k4, (D,), dtype=jnp.float32) * 0.1
        return dw_weight, dw_bias, pw_weight, pw_bias

    kx1, kp1, kx2, kp2, kx3, kp3 = jax.random.split(root, 6)

    # --- Test 1: module-scale shapes, single time tile, lane-padded D -------
    B, T, D, K = 2, 8, 32, 3
    x = jax.random.normal(kx1, (B, T, D), dtype=jnp.float32)
    params = make_params(kp1, D, K)
    out = jax.block_until_ready(causal_depthwise_conv1d(x, *params, kernel_size=K))
    ref = _reference(x, *params, K)
    assert out.shape == (B, T, D)
    assert jnp.allclose(out, ref, atol=1e-4, rtol=1e-4), "mismatch (test 1)"

    # --- Test 2: multiple time tiles (exercises the causal history carry) ---
    B2, T2, D2, K2 = 2, 32, 32, 3
    x2 = jax.random.normal(kx2, (B2, T2, D2), dtype=jnp.float32)
    params2 = make_params(kp2, D2, K2)
    out2 = jax.block_until_ready(
        causal_depthwise_conv1d(x2, *params2, kernel_size=K2, time_tile=8))
    ref2 = _reference(x2, *params2, K2)
    assert out2.shape == (B2, T2, D2)
    assert jnp.allclose(out2, ref2, atol=1e-4, rtol=1e-4), "mismatch (test 2)"

    # --- Test 3: ragged T (tail pad), lane-aligned D, K=4, carry across tiles
    B3, T3, D3, K3 = 2, 20, 128, 4
    x3 = jax.random.normal(kx3, (B3, T3, D3), dtype=jnp.float32)
    params3 = make_params(kp3, D3, K3)
    out3 = jax.block_until_ready(
        causal_depthwise_conv1d(x3, *params3, kernel_size=K3, time_tile=16))
    ref3 = _reference(x3, *params3, K3)
    assert out3.shape == (B3, T3, D3)
    assert jnp.allclose(out3, ref3, atol=2e-3, rtol=2e-3), "mismatch (test 3)"

    print("KERNEL_OK")
</pallas_src>

<mosaic_0001>
module attributes {stable_mosaic.version = 11 : i64} {
  func.func @_causal_dwconv_kernel(%arg0: i32, %arg1: i32, %arg2: memref<1x8x128xf32, #tpu.memory_space<vmem>>, %arg3: memref<3x128xf32, #tpu.memory_space<vmem>>, %arg4: memref<128x128xf32, #tpu.memory_space<vmem>>, %arg5: memref<1x128xf32, #tpu.memory_space<vmem>>, %arg6: memref<1x8x128xf32, #tpu.memory_space<vmem>>, %arg7: memref<8x128xf32, #tpu.memory_space<vmem>>) attributes {dimension_semantics = [#tpu.dimension_semantics<parallel>, #tpu.dimension_semantics<arbitrary>], iteration_bounds = array<i64: 2, 1>, scalar_prefetch = 0 : i64, scratch_operands = 1 : i64, tpu.core_type = #tpu.core_type<tc>, window_params = [{transform_indices = @transform_0, window_bounds = array<i64: 1, 8, 128>}, {pipeline_mode = #tpu.pipeline_mode<synchronous>, transform_indices = @transform_1, window_bounds = array<i64: 3, 128>}, {pipeline_mode = #tpu.pipeline_mode<synchronous>, transform_indices = @transform_2, window_bounds = array<i64: 128, 128>}, {pipeline_mode = #tpu.pipeline_mode<synchronous>, transform_indices = @transform_3, window_bounds = array<i64: 1, 128>}, {transform_indices = @transform_4, window_bounds = array<i64: 1, 8, 128>}]} {
    %c0 = arith.constant 0 : index
    %c0_0 = arith.constant 0 : index
    %c0_1 = arith.constant 0 : index
    %0 = vector.load %arg2[%c0, %c0_0, %c0_1] : memref<1x8x128xf32, #tpu.memory_space<vmem>>, vector<1x8x128xf32>
    %1 = vector.shape_cast %0 : vector<1x8x128xf32> to vector<8x128xf32>
    %c0_i32 = arith.constant 0 : i32
    %2 = arith.cmpi eq, %arg1, %c0_i32 : i32
    %3 = arith.extui %2 : i1 to i32
    %c0_i32_2 = arith.constant 0 : i32
    %4 = arith.cmpi ne, %3, %c0_i32_2 : i32
    scf.if %4 {
      %cst_16 = arith.constant 0.000000e+00 : f32
      %28 = vector.broadcast %cst_16 : f32 to vector<8x128xf32>
      %c0_17 = arith.constant 0 : index
      %c0_18 = arith.constant 0 : index
      %29 = vector.load %arg7[%c0_17, %c0_18] : memref<8x128xf32, #tpu.memory_space<vmem>>, vector<8x128xf32>
      tpu.vector_store %arg7[%c0_17, %c0_18], %28 {strides = array<i32>} : memref<8x128xf32, #tpu.memory_space<vmem>>, vector<8x128xf32>,
    } else {
    }
    %c0_3 = arith.constant 0 : index
    %c0_4 = arith.constant 0 : index
    %5 = vector.load %arg7[%c0_3, %c0_4] : memref<8x128xf32, #tpu.memory_space<vmem>>, vector<8x128xf32>
    %6 = tpu.concatenate %5, %1 in 0 : vector<8x128xf32>, vector<8x128xf32> -> vector<16x128xf32>
    %c2 = arith.constant 2 : index
    %c0_5 = arith.constant 0 : index
    %7 = vector.load %arg3[%c2, %c0_5] : memref<3x128xf32, #tpu.memory_space<vmem>>, vector<1x128xf32>
    %8 = vector.broadcast %7 : vector<1x128xf32> to vector<8x128xf32>
    %9 = arith.mulf %8, %1 : vector<8x128xf32>
    %c0_6 = arith.constant 0 : index
    %c0_7 = arith.constant 0 : index
    %10 = vector.load %arg3[%c0_6, %c0_7] : memref<3x128xf32, #tpu.memory_space<vmem>>, vector<1x128xf32>
    %11 = vector.extract_strided_slice %6 {offsets = [6, 0], sizes = [8, 128], strides = [1, 1]} : vector<16x128xf32> to vector<8x128xf32>
    %12 = vector.broadcast %10 : vector<1x128xf32> to vector<8x128xf32>
    %13 = arith.mulf %12, %11 : vector<8x128xf32>
    %14 = arith.addf %9, %13 : vector<8x128xf32>
    %c1 = arith.constant 1 : index
    %c0_8 = arith.constant 0 : index
    %15 = vector.load %arg3[%c1, %c0_8] : memref<3x128xf32, #tpu.memory_space<vmem>>, vector<1x128xf32>
    %16 = vector.extract_strided_slice %6 {offsets = [7, 0], sizes = [8, 128], strides = [1, 1]} : vector<16x128xf32> to vector<8x128xf32>
    %17 = vector.broadcast %15 : vector<1x128xf32> to vector<8x128xf32>
    %18 = arith.mulf %17, %16 : vector<8x128xf32>
    %19 = arith.addf %14, %18 : vector<8x128xf32>
    %c0_9 = arith.constant 0 : index
    %c0_10 = arith.constant 0 : index
    %20 = vector.load %arg4[%c0_9, %c0_10] : memref<128x128xf32, #tpu.memory_space<vmem>>, vector<128x128xf32>
    %cst = arith.constant dense<0.000000e+00> : vector<8x128xf32>
    %21 = tpu.matmul %19, %20, %cst {dimension_numbers = #tpu.dot_dimension_numbers<[1], [0], [0], [1], [0, 0, 1, 1], [], []>} : vector<8x128xf32>, vector<128x128xf32>, vector<8x128xf32> -> vector<8x128xf32>
    %c0_11 = arith.constant 0 : index
    %c0_12 = arith.constant 0 : index
    %22 = vector.load %arg5[%c0_11, %c0_12] : memref<1x128xf32, #tpu.memory_space<vmem>>, vector<1x128xf32>
    %23 = vector.broadcast %22 : vector<1x128xf32> to vector<8x128xf32>
    %24 = arith.addf %21, %23 : vector<8x128xf32>
    %c0_13 = arith.constant 0 : index
    %c0_14 = arith.constant 0 : index
    %c0_15 = arith.constant 0 : index
    %25 = vector.load %arg6[%c0_13, %c0_14, %c0_15] : memref<1x8x128xf32, #tpu.memory_space<vmem>>, vector<1x8x128xf32>
    %26 = vector.shape_cast %25 : vector<1x8x128xf32> to vector<8x128xf32>
    %27 = vector.shape_cast %24 : vector<8x128xf32> to vector<1x8x128xf32>
    tpu.vector_store %arg6[%c0_13, %c0_14, %c0_15], %27 {strides = array<i32>} : memref<1x8x128xf32, #tpu.memory_space<vmem>>, vector<1x8x128xf32>,
    return
  }
  func.func @transform_0(%arg0: i32, %arg1: i32) -> (i32, i32, i32) {
    %c0_i32 = arith.constant 0 : i32
    %c0_i32_0 = arith.constant 0 : i32
    return %arg0, %arg1, %c0_i32 : i32, i32, i32
  }
  func.func @transform_1(%arg0: i32, %arg1: i32) -> (i32, i32) {
    %c0_i32 = arith.constant 0 : i32
    %c0_i32_0 = arith.constant 0 : i32
    %c0_i32_1 = arith.constant 0 : i32
    return %c0_i32, %c0_i32_0 : i32, i32
  }
  func.func @transform_2(%arg0: i32, %arg1: i32) -> (i32, i32) {
    %c0_i32 = arith.constant 0 : i32
    %c0_i32_0 = arith.constant 0 : i32
    %c0_i32_1 = arith.constant 0 : i32
    return %c0_i32, %c0_i32_0 : i32, i32
  }
  func.func @transform_3(%arg0: i32, %arg1: i32) -> (i32, i32) {
    %c0_i32 = arith.constant 0 : i32
    %c0_i32_0 = arith.constant 0 : i32
    %c0_i32_1 = arith.constant 0 : i32
    return %c0_i32, %c0_i32_0 : i32, i32
  }
  func.func @transform_4(%arg0: i32, %arg1: i32) -> (i32, i32, i32) {
    %c0_i32 = arith.constant 0 : i32
    %c0_i32_0 = arith.constant 0 : i32
    return %arg0, %arg1, %c0_i32 : i32, i32, i32
  }
}

module attributes {stable_mosaic.version = 11 : i64} {
  func.func @_causal_dwconv_kernel(%arg0: i32, %arg1: i32, %arg2: memref<1x8x128xf32, #tpu.memory_space<vmem>>, %arg3: memref<3x128xf32, #tpu.memory_space<vmem>>, %arg4: memref<128x128xf32, #tpu.memory_space<vmem>>, %arg5: memref<1x128xf32, #tpu.memory_space<vmem>>, %arg6: memref<1x8x128xf32, #tpu.memory_space<vmem>>, %arg7: memref<8x128xf32, #tpu.memory_space<vmem>>) attributes {dimension_semantics = [#tpu.dimension_semantics<parallel>, #tpu.dimension_semantics<arbitrary>], iteration_bounds = array<i64: 2, 1>, scalar_prefetch = 0 : i64, scratch_operands = 1 : i64, tpu.core_type = #tpu.core_type<tc>, window_params = [{transform_indices = @transform_0, window_bounds = array<i64: 1, 8, 128>}, {pipeline_mode = #tpu.pipeline_mode<synchronous>, transform_indices = @transform_1, window_bounds = array<i64: 3, 128>}, {pipeline_mode = #tpu.pipeline_mode<synchronous>, transform_indices = @transform_2, window_bounds = array<i64: 128, 128>}, {pipeline_mode = #tpu.pipeline_mode<synchronous>, transform_indices = @transform_3, window_bounds = array<i64: 1, 128>}, {transform_indices = @transform_4, window_bounds = array<i64: 1, 8, 128>}]} {
    %c0 = arith.constant 0 : index
    %c0_0 = arith.constant 0 : index
    %c0_1 = arith.constant 0 : index
    %0 = vector.load %arg2[%c0, %c0_0, %c0_1] : memref<1x8x128xf32, #tpu.memory_space<vmem>>, vector<1x8x128xf32>
    %1 = vector.shape_cast %0 : vector<1x8x128xf32> to vector<8x128xf32>
    %c0_i32 = arith.constant 0 : i32
    %2 = arith.cmpi eq, %arg1, %c0_i32 : i32
    %3 = arith.extui %2 : i1 to i32
    %c0_i32_2 = arith.constant 0 : i32
    %4 = arith.cmpi ne, %3, %c0_i32_2 : i32
    scf.if %4 {
      %cst_16 = arith.constant 0.000000e+00 : f32
      %28 = vector.broadcast %cst_16 : f32 to vector<8x128xf32>
      %c0_17 = arith.constant 0 : index
      %c0_18 = arith.constant 0 : index
      %29 = vector.load %arg7[%c0_17, %c0_18] : memref<8x128xf32, #tpu.memory_space<vmem>>, vector<8x128xf32>
      tpu.vector_store %arg7[%c0_17, %c0_18], %28 {strides = array<i32>} : memref<8x128xf32, #tpu.memory_space<vmem>>, vector<8x128xf32>,
    } else {
    }
    %c0_3 = arith.constant 0 : index
    %c0_4 = arith.constant 0 : index
    %5 = vector.load %arg7[%c0_3, %c0_4] : memref<8x128xf32, #tpu.memory_space<vmem>>, vector<8x128xf32>
    %6 = tpu.concatenate %5, %1 in 0 : vector<8x128xf32>, vector<8x128xf32> -> vector<16x128xf32>
    %c2 = arith.constant 2 : index
    %c0_5 = arith.constant 0 : index
    %7 = vector.load %arg3[%c2, %c0_5] : memref<3x128xf32, #tpu.memory_space<vmem>>, vector<1x128xf32>
    %8 = vector.broadcast %7 : vector<1x128xf32> to vector<8x128xf32>
    %9 = arith.mulf %8, %1 : vector<8x128xf32>
    %c0_6 = arith.constant 0 : index
    %c0_7 = arith.constant 0 : index
    %10 = vector.load %arg3[%c0_6, %c0_7] : memref<3x128xf32, #tpu.memory_space<vmem>>, vector<1x128xf32>
    %11 = vector.extract_strided_slice %6 {offsets = [6, 0], sizes = [8, 128], strides = [1, 1]} : vector<16x128xf32> to vector<8x128xf32>
    %12 = vector.broadcast %10 : vector<1x128xf32> to vector<8x128xf32>
    %13 = arith.mulf %12, %11 : vector<8x128xf32>
    %14 = arith.addf %9, %13 : vector<8x128xf32>
    %c1 = arith.constant 1 : index
    %c0_8 = arith.constant 0 : index
    %15 = vector.load %arg3[%c1, %c0_8] : memref<3x128xf32, #tpu.memory_space<vmem>>, vector<1x128xf32>
    %16 = vector.extract_strided_slice %6 {offsets = [7, 0], sizes = [8, 128], strides = [1, 1]} : vector<16x128xf32> to vector<8x128xf32>
    %17 = vector.broadcast %15 : vector<1x128xf32> to vector<8x128xf32>
    %18 = arith.mulf %17, %16 : vector<8x128xf32>
    %19 = arith.addf %14, %18 : vector<8x128xf32>
    %c0_9 = arith.constant 0 : index
    %c0_10 = arith.constant 0 : index
    %20 = vector.load %arg4[%c0_9, %c0_10] : memref<128x128xf32, #tpu.memory_space<vmem>>, vector<128x128xf32>
    %cst = arith.constant dense<0.000000e+00> : vector<8x128xf32>
    %21 = tpu.matmul %19, %20, %cst {dimension_numbers = #tpu.dot_dimension_numbers<[1], [0], [0], [1], [0, 0, 1, 1], [], []>} : vector<8x128xf32>, vector<128x128xf32>, vector<8x128xf32> -> vector<8x128xf32>
    %c0_11 = arith.constant 0 : index
    %c0_12 = arith.constant 0 : index
    %22 = vector.load %arg5[%c0_11, %c0_12] : memref<1x128xf32, #tpu.memory_space<vmem>>, vector<1x128xf32>
    %23 = vector.broadcast %22 : vector<1x128xf32> to vector<8x128xf32>
    %24 = arith.addf %21, %23 : vector<8x128xf32>
    %c0_13 = arith.constant 0 : index
    %c0_14 = arith.constant 0 : index
    %c0_15 = arith.constant 0 : index
    %25 = vector.load %arg6[%c0_13, %c0_14, %c0_15] : memref<1x8x128xf32, #tpu.memory_space<vmem>>, vector<1x8x128xf32>
    %26 = vector.shape_cast %25 : vector<1x8x128xf32> to vector<8x128xf32>
    %27 = vector.shape_cast %24 : vector<8x128xf32> to vector<1x8x128xf32>
    tpu.vector_store %arg6[%c0_13, %c0_14, %c0_15], %27 {strides = array<i32>} : memref<1x8x128xf32, #tpu.memory_space<vmem>>, vector<1x8x128xf32>,
    return
  }
  func.func @transform_0(%arg0: i32, %arg1: i32) -> (i32, i32, i32) {
    %c0_i32 = arith.constant 0 : i32
    %c0_i32_0 = arith.constant 0 : i32
    return %arg0, %arg1, %c0_i32 : i32, i32, i32
  }
  func.func @transform_1(%arg0: i32, %arg1: i32) -> (i32, i32) {
    %c0_i32 = arith.constant 0 : i32
    %c0_i32_0 = arith.constant 0 : i32
    %c0_i32_1 = arith.constant 0 : i32
    return %c0_i32, %c0_i32_0 : i32, i32
  }
  func.func @transform_2(%arg0: i32, %arg1: i32) -> (i32, i32) {
    %c0_i32 = arith.constant 0 : i32
    %c0_i32_0 = arith.constant 0 : i32
    %c0_i32_1 = arith.constant 0 : i32
    return %c0_i32, %c0_i32_0 : i32, i32
  }
  func.func @transform_3(%arg0: i32, %arg1: i32) -> (i32, i32) {
    %c0_i32 = arith.constant 0 : i32
    %c0_i32_0 = arith.constant 0 : i32
    %c0_i32_1 = arith.constant 0 : i32
    return %c0_i32, %c0_i32_0 : i32, i32
  }
  func.func @transform_4(%arg0: i32, %arg1: i32) -> (i32, i32, i32) {
    %c0_i32 = arith.constant 0 : i32
    %c0_i32_0 = arith.constant 0 : i32
    return %arg0, %arg1, %c0_i32 : i32, i32, i32
  }
}

</mosaic_0001>

<bundles_post_ra>
// kernel: tpu_custom_call.1
= control target key start
LH: loop header
LB: loop body
LE: loop exit
PB: predicated region body
PF: predicated region fallthrough
CT: control target
= control target key end

     0   :  { %9 = vsyncpa [#allocation4], 0  ;;  %s920_s0 = inlined_call_operand.hbm [shape: f32[2,8,128], index: 0, kind: input, shape index: {}]   ;;  %s921_s1 = inlined_call_operand.hbm [shape: f32[3,128], index: 1, kind: input, shape index: {}]   ;;  %s922_s2 = inlined_call_operand.hbm [shape: f32[128,128], index: 2, kind: input, shape index: {}]   ;;  %s923_s3 = inlined_call_operand.vmem [shape: f32[1,128], index: 3, kind: input, shape index: {}]   ;;  %s924_s4 = inlined_call_operand.hbm [shape: f32[2,8,128], index: 4, kind: output, shape index: {}]  }
   0x1   :  { %11 = vsyncpa [#allocation4 + $0x1], 0 }
   0x2   :  { %12 = vsyncpa [#allocation7], 0 }
   0x3   :  { %13 = vsyncpa [#allocation5], 0 }
   0x4   :  { %15 = vsyncpa [#allocation5 + $0x1], 0  ;;  %s767_s15 = smov 0   ;;  %s769_s16 = smov 0  }
   0x5   :  { %s771_s17 = smov 0   ;;  %s773_s18 = smov 0  }
   0x6   :  { %s775_s19 = smov 0   ;;  %s777_s20 = smov 0  }
   0x7 LB: > { %s454_s21 = sadd.s32 4294967295, %s736_s20   ;;  %s455_s22 = sadd.s32 4294967294, %s736_s20   ;;  %s736_s20 = sphi %s777_s20, %s21_s20   ;;  %s732_s19 = sphi %s775_s19, %s934_s19   ;;  %s728_s18 = sphi %s773_s18, %s933_s18   ;;  %s724_s17 = sphi %s771_s17, %s932_s17   ;;  %s720_s16 = sphi %s769_s16, %s931_s16   ;;  %s716_s15 = sphi %s767_s15, %s930_s15  }
   0x8   : > { %p55_p0 = scmp.ne.s32.totalorder %s720_s16, %s716_s15  ;;  %p803_p1 = scmp.eq.s32.totalorder %s454_s21, 0 }
   0x9   : > { %p150_p2 = scmp.eq.s32.totalorder %s455_s22, 1  ;;  %p456_p4 = scmp.ge.s32.totalorder %s736_s20, 1 }
   0xa   : > { %p809_p3 = por %p803_p1, %p55_p0  ;;  %p157_p6 = scmp.lt.s32.totalorder %s736_s20, 3 }
   0xb   : > { %p814_p5 = por %p150_p2, %p55_p0  ;;  %s169_s28 = sshll.u32 %s921_s1, 4  ;;  %s170_s28 = int_to_ptr.hbm [resolvable:$true] %s169_s28 }
   0xc   : > { %p822_p7 = pnand %p456_p4, %p157_p6  ;;  %p459_p8 = scmp.ge.s32.totalorder %s736_s20, 2 }
   0xd   : > { %s738_s30 = smov [#allocation6]   ;;  %s180_s8 = sshll.u32 %s922_s2, 4  ;;  %s181_s8 = int_to_ptr.hbm [resolvable:$true] %s180_s8 }
   0xe   : > { %p483_p9 = pneg %p822_p7  ;;  %s171_s5 = sshll.u32 %s738_s30, 4  ;;  %s172_s5 = int_to_ptr.vmem [resolvable:$true] %s171_s5 }
   0xf   : > { %s739_s9 = smov [#allocation8]   ;;  %s740_s11 = smov 128  }
  0x10   : > { %p484_p10 = pnand %p483_p9, %p803_p1  ;;  %s182_s10 = sshll.u32 %s739_s9, 4  ;;  %s183_s10 = int_to_ptr.vmem [resolvable:$true] %s182_s10 }
  0x11   : > { %s741_s12 = smov 8   ;;  %p144_p11 = scmp.eq.s32.totalorder %s454_s21, 1 }
  0x12   : > { %486 = dma.hbm_to_vmem [thread:$0]  (!%p484_p10), %s170_s28, 64, %s172_s5, [#allocation7]  }
  0x13   : > { %489 = dma.hbm_to_vmem [thread:$0]  (!%p484_p10), %s181_s8, 2048, %s183_s10, [#allocation7], %s740_s11, %s740_s11, %s741_s12  }
  0x14   : > { %s33_s13 = sadd.s32 1, %s732_s19  ;;  %s42_s14 = sadd.s32 1, %s724_s17 }
  0x15   : > { %p35_p12 = scmp.ge.s32.totalorder %s33_s13, 2  ;;  %p49_p13 = scmp.ne.s32.totalorder %s724_s17, %s720_s16 }
  0x16   : > { %p50_p0 = scmp.eq.s32.totalorder %s736_s20, 0  ;;  %p500_p4 = scmp.lt.s32.totalorder %s736_s20, 2 }
  0x17   : > { %s936_s13 = smov (%p35_p12, %s33_s13), 0  ;;  %p843_p2 = por %p144_p11, %p49_p13 }
  0x18   : > { %s37_s26 = ssub.s32 %s732_s19, %s936_s13  ;;  %s199_s27 = sand.u32 1, %s724_s17  }
  0x19   : > { %p40_p6 = scmp.eq.s32.totalorder %s37_s26, 0  ;;  %p51_p9 = por %p50_p0, %p49_p13 }
  0x1a   : > { %s460_s28 = sshll.u32 %s199_s27, 3  ;;  %s461_s21 = sshll.u32 %s732_s19, 3 }
  0x1b   : > { %s853_s30 = scalar_select %p40_p6, %s724_s17, %s42_s14  }
  0x1c   : > { %s208_s7 = scalar_lea.hbm %s920_s0, %s461_s21  ;;  %s203_s9 = scalar_lea.vmem [#allocation3], %s460_s28 }
  0x1d   : > { %s210_s8 = sshll.u32 %s208_s7, 4  ;;  %s212_s10 = sshll.u32 %s203_s9, 4  ;;  %s211_s8 = int_to_ptr.hbm [resolvable:$true] %s210_s8  ;;  %s213_s10 = int_to_ptr.vmem [resolvable:$true] %s212_s10 }
  0x1e   : > { %p491_p10 = pnand %p500_p4, %p51_p9  ;;  %s200_s11 = scalar_lea.sflag [#allocation4], %s199_s27 }
  0x1f   : > { %221 = sbr.rel (%p822_p7) target bundleno = 202 (0xca), region = 36  ;;  %s863_s12 = sand.u32 (!%p822_p7), 1, %s720_s16  }
  0x20   : > { %493 = dma.hbm_to_vmem [thread:$0]  (!%p491_p10), %s211_s8, 128, %s213_s10, %s200_s11  }
  0x21   : > { %s463_s14 = sshll.u32 (!%p822_p7), %s863_s12, 3  ;;  %s224_s26 = scalar_lea.sflag (!%p822_p7), [#allocation4], %s863_s12 }
  0x22   : > { %s227_s28 = scalar_lea.vmem (!%p822_p7), [#allocation3], %s463_s14 }
  0x24   : > { %703 = dma.done.wait (%p809_p3), %s224_s26, 128  }
  0x25   : > { %705 = vsyncadd (%p809_p3), %s224_s26, 4294967168 }
  0x26   : > { %707 = dma.done.wait (%p803_p1), [#allocation7], 2112  }
  0x27   : > { %709 = vsyncadd (%p803_p1), [#allocation7], 4294965184  ;;  %v312_v0 = vld [vmem:[#allocation8 + $0x78] sm:$0xff]  ;;  %v311_v1 = vld [vmem:[#allocation8 + $0x70] sm:$0xff]  ;;  %vm279_vm0 = vcmask 1041408   ;;  %vm291_vm1 = vcmask 1040384  }
  0x28   : > { %317 = vmatpush.msra.mxu0 %v312_v0  ;;  %v310_v2 = vld [vmem:[#allocation8 + $0x68] sm:$0xff]  ;;  %v309_v3 = vld [vmem:[#allocation8 + $0x60] sm:$0xff]  ;;  %v308_v4 = vld [vmem:[#allocation8 + $0x58] sm:$0xff]  ;;  %s468_s23 = sshll.u32 %s728_s18, 3  ;;  %s262_s6 = scalar_lea.vmem [#allocation9], %s463_s14 }
  0x29   : > { %v307_v5 = vld [vmem:[#allocation8 + $0x50] sm:$0xff]  ;;  %v557_v6 = vld [vmem:[#allocation6] ss:$0 sm:$0xff]  ;;  %v306_v7 = vld [vmem:[#allocation8 + $0x48] sm:$0xff]  ;;  %s350_s27 = scalar_lea.hbm %s924_s4, %s468_s23  ;;  %s352_s7 = sshll.u32 %s262_s6, 4  ;;  %s353_s7 = int_to_ptr.vmem [resolvable:$true] %s352_s7 }
  0x2a   : > { %318 = vmatpush.msra.mxu0 %v311_v1  ;;  %v263_v8 = vld [vmem:[%s227_s28] sm:$0xff]  ;;  %v305_v9 = vld [vmem:[#allocation8 + $0x40] sm:$0xff]  ;;  %v275_v10 = vmul.f32 0.0, %v557_v6  ;;  %v558_v12 = vld [vmem:[#allocation6 + $0x1] ss:$0 sm:$0xff]  ;;  %s354_s8 = sshll.u32 %s350_s27, 4  ;;  %s355_s8 = int_to_ptr.hbm [resolvable:$true] %s354_s8 }
  0x2b   : > { %v276_v11 = vmul.f32 %v557_v6, %v263_v8  ;;  %v304_v13 = vld [vmem:[#allocation8 + $0x38] sm:$0xff]  ;;  %v303_v14 = vld [vmem:[#allocation8 + $0x30] sm:$0xff]  ;;  %v287_v18 = vmul.f32 0.0, %v558_v12  ;;  %v288_v19 = vmul.f32 %v558_v12, %v263_v8  ;;  %v302_v20 = vld [vmem:[#allocation8 + $0x28] sm:$0xff]  ;;  %s339_s9 = scalar_lea.sflag [#allocation5], %s863_s12  ;;  %s664_s18 = sshra.s32 %s355_s8, 4  ;;  %s665_s18 = int_to_ptr.hbm [resolvable:$true] %s664_s18 }
  0x2c   : > { %319 = vmatpush.msra.mxu0 %v310_v2  ;;  %v556_v15 = vld [vmem:[#allocation6 + $0x2] ss:$0 sm:$0xff]  ;;  %v280_v16 = vrot.slane %v275_v10, 6  ;;  %v301_v21 = vld [vmem:[#allocation8 + $0x20] sm:$0xff]  ;;  %v299_v27 = vld [vmem:[#allocation8 + $0x10] sm:$0xff]  ;;  %s666_s10 = scalar_lea.hbm %s665_s18, 8  ;;  %p671_p11 = scmp.lt.s32.totalorder %s665_s18, %s924_s4 }
  0x2d   : > { %v281_v17 = vrot.slane %v276_v11, 6  ;;  %v272_v22 = vmul.f32 %v556_v15, %v263_v8  ;;  %v292_v24 = vrot.slane %v287_v18, 7  ;;  %v293_v25 = vrot.slane %v288_v19, 7  ;;  %v300_v26 = vld [vmem:[#allocation8 + $0x18] sm:$0xff]  ;;  %v298_v30 = vld [vmem:[#allocation8 + $0x8] sm:$0xff]  ;;  %v297_v31 = vld [vmem:[#allocation8] sm:$0xff]  ;;  %p667_p1 = scmp.ne.s32.totalorder %s665_s18, %s666_s10 }
  0x2e   : > { %320 = vmatpush.msra.mxu0 %v309_v3  ;;  %v559_v33 = vld [vmem:[%s923_s3] ss:$0 sm:$0xff]  ;;  %s670_s28 = scalar_lea.hbm %s924_s4, 16 }
  0x2f   : > { %v282_v23 = vsel %vm279_vm0, %v280_v16, %v281_v17  ;;  %v294_v29 = vsel %vm291_vm1, %v292_v24, %v293_v25  ;;  %p668_p3 = pnand %p667_p1, %p843_p2  ;;  %p672_p12 = scmp.lt.s32.totalorder %s670_s28, %s666_s10 }
  0x30   : > { %321 = vmatpush.msra.mxu0 %v308_v4  ;;  %v284_v28 = vadd.f32 %v282_v23, %v272_v22 }
  0x31   : > { %p669_p7 = pneg %p668_p3  ;;  %p673_p13 = por %p672_p12, %p671_p11 }
  0x32   : > { %322 = vmatpush.msra.mxu0 %v307_v5  ;;  %v296_v32 = vadd.f32 %v294_v29, %v284_v28 }
  0x33   : > { %p674_p0 = pnand %p673_p13, %p669_p7 }
  0x34   : > { %323 = vmatpush.msra.mxu0 %v306_v7 }
  0x36   : > { %324 = vmatpush.msra.mxu0 %v305_v9 }
  0x38   : > { %325 = vmatpush.msra.mxu0 %v304_v13 }
  0x3a   : > { %326 = vmatpush.msra.mxu0 %v303_v14 }
  0x3c   : > { %327 = vmatpush.msra.mxu0 %v302_v20 }
  0x3e   : > { %328 = vmatpush.msra.mxu0 %v301_v21 }
  0x40   : > { %329 = vmatpush.msra.mxu0 %v300_v26 }
  0x42   : > { %330 = vmatpush.msra.mxu0 %v299_v27 }
  0x44   : > { %331 = vmatpush.msra.mxu0 %v298_v30 }
  0x46   : > { %332 = vmatpush.msra.mxu0 %v297_v31 }
  0x47   : > { %333 = vmatmul.f32.vlgmr.msra.gmra.mxu0 %v296_v32 }
  0xc4   : > { %v334_v34 = vpop.f32.mrf.mxu0 }
  0xc5   : > { %v335_v35 = vadd.f32 %v559_v33, %v334_v34 }
  0xc7   : > { %337 = vst [vmem:[%s262_s6] sm:$0xff] %v335_v35 }
  0xc8   : > { %677 = shalt.err (!%p674_p0)
}
  0xc9   : > { %481 = dma.vmem_to_hbm [thread:$0]  (%p843_p2), %s353_s7, 128, %s355_s8, %s339_s9  }
  0xca PF: > { %s366_s12 = sand.u32 1, %s716_s15   ;;  %p495_p4 = pnand %p459_p8, %p814_p5 }
  0xcb   : > { %s367_s24 = scalar_lea.sflag [#allocation5], %s366_s12 }
  0xcc   : > { %p496_p6 = pneg %p495_p4 }
  0xce   : > { %711 = dma.done.wait (%p496_p6), %s367_s24, 128  }
  0xcf   : > { %713 = vsyncadd (%p496_p6), %s367_s24, 4294967168  ;;  %s21_s20 = sadd.s32 1, %s736_s20   ;;  %s930_s15 = smov %s720_s16 }
  0xd0   : > { %p18_p9 = scmp.ge.s32.totalorder %s21_s20, 4   ;;  %s931_s16 = smov %s724_s17 }
  0xd1   : > { %s932_s17 = smov %s853_s30  ;;  %s933_s18 = smov %s732_s19 }
  0xd2   : > { %s934_s19 = smov %s936_s13  ;;  %20 = sbr.rel (!%p18_p9) target bundleno = 7 (0x7), region = 93 }
  0xd7   :  { %373 = vsyncpa [#allocation4], 1 }
  0xd8   :  { %375 = vsyncpa [#allocation4 + $0x1], 1 }
  0xd9   :  { %376 = vsyncpa [#allocation7], 1 }
  0xda   :  { %377 = vsyncpa [#allocation5], 1 }
  0xdb   :  { %379 = vsyncpa [#allocation5 + $0x1], 1 }

// kernel: tpu_custom_call.1
= control target key start
LH: loop header
LB: loop body
LE: loop exit
PB: predicated region body
PF: predicated region fallthrough
CT: control target
= control target key end

     0   :  { %9 = vsyncpa [#allocation4], 0  ;;  %s920_s0 = inlined_call_operand.hbm [shape: f32[2,8,128], index: 0, kind: input, shape index: {}]   ;;  %s921_s1 = inlined_call_operand.hbm [shape: f32[3,128], index: 1, kind: input, shape index: {}]   ;;  %s922_s2 = inlined_call_operand.hbm [shape: f32[128,128], index: 2, kind: input, shape index: {}]   ;;  %s923_s3 = inlined_call_operand.vmem [shape: f32[1,128], index: 3, kind: input, shape index: {}]   ;;  %s924_s4 = inlined_call_operand.hbm [shape: f32[2,8,128], index: 4, kind: output, shape index: {}]  }
   0x1   :  { %11 = vsyncpa [#allocation4 + $0x1], 0 }
   0x2   :  { %12 = vsyncpa [#allocation7], 0 }
   0x3   :  { %13 = vsyncpa [#allocation5], 0 }
   0x4   :  { %15 = vsyncpa [#allocation5 + $0x1], 0  ;;  %s767_s15 = smov 0   ;;  %s769_s16 = smov 0  }
   0x5   :  { %s771_s17 = smov 0   ;;  %s773_s18 = smov 0  }
   0x6   :  { %s775_s19 = smov 0   ;;  %s777_s20 = smov 0  }
   0x7 LB: > { %s454_s21 = sadd.s32 4294967295, %s736_s20   ;;  %s455_s22 = sadd.s32 4294967294, %s736_s20   ;;  %s736_s20 = sphi %s777_s20, %s21_s20   ;;  %s732_s19 = sphi %s775_s19, %s934_s19   ;;  %s728_s18 = sphi %s773_s18, %s933_s18   ;;  %s724_s17 = sphi %s771_s17, %s932_s17   ;;  %s720_s16 = sphi %s769_s16, %s931_s16   ;;  %s716_s15 = sphi %s767_s15, %s930_s15  }
   0x8   : > { %p55_p0 = scmp.ne.s32.totalorder %s720_s16, %s716_s15  ;;  %p803_p1 = scmp.eq.s32.totalorder %s454_s21, 0 }
   0x9   : > { %p150_p2 = scmp.eq.s32.totalorder %s455_s22, 1  ;;  %p456_p4 = scmp.ge.s32.totalorder %s736_s20, 1 }
   0xa   : > { %p809_p3 = por %p803_p1, %p55_p0  ;;  %p157_p6 = scmp.lt.s32.totalorder %s736_s20, 3 }
   0xb   : > { %p814_p5 = por %p150_p2, %p55_p0  ;;  %s169_s28 = sshll.u32 %s921_s1, 4  ;;  %s170_s28 = int_to_ptr.hbm [resolvable:$true] %s169_s28 }
   0xc   : > { %p822_p7 = pnand %p456_p4, %p157_p6  ;;  %p459_p8 = scmp.ge.s32.totalorder %s736_s20, 2 }
   0xd   : > { %s738_s30 = smov [#allocation6]   ;;  %s180_s8 = sshll.u32 %s922_s2, 4  ;;  %s181_s8 = int_to_ptr.hbm [resolvable:$true] %s180_s8 }
   0xe   : > { %p483_p9 = pneg %p822_p7  ;;  %s171_s5 = sshll.u32 %s738_s30, 4  ;;  %s172_s5 = int_to_ptr.vmem [resolvable:$true] %s171_s5 }
   0xf   : > { %s739_s9 = smov [#allocation8]   ;;  %s740_s11 = smov 128  }
  0x10   : > { %p484_p10 = pnand %p483_p9, %p803_p1  ;;  %s182_s10 = sshll.u32 %s739_s9, 4  ;;  %s183_s10 = int_to_ptr.vmem [resolvable:$true] %s182_s10 }
  0x11   : > { %s741_s12 = smov 8   ;;  %p144_p11 = scmp.eq.s32.totalorder %s454_s21, 1 }
  0x12   : > { %486 = dma.hbm_to_vmem [thread:$0]  (!%p484_p10), %s170_s28, 64, %s172_s5, [#allocation7]  }
  0x13   : > { %489 = dma.hbm_to_vmem [thread:$0]  (!%p484_p10), %s181_s8, 2048, %s183_s10, [#allocation7], %s740_s11, %s740_s11, %s741_s12  }
  0x14   : > { %s33_s13 = sadd.s32 1, %s732_s19  ;;  %s42_s14 = sadd.s32 1, %s724_s17 }
  0x15   : > { %p35_p12 = scmp.ge.s32.totalorder %s33_s13, 2  ;;  %p49_p13 = scmp.ne.s32.totalorder %s724_s17, %s720_s16 }
  0x16   : > { %p50_p0 = scmp.eq.s32.totalorder %s736_s20, 0  ;;  %p500_p4 = scmp.lt.s32.totalorder %s736_s20, 2 }
  0x17   : > { %s936_s13 = smov (%p35_p12, %s33_s13), 0  ;;  %p843_p2 = por %p144_p11, %p49_p13 }
  0x18   : > { %s37_s26 = ssub.s32 %s732_s19, %s936_s13  ;;  %s199_s27 = sand.u32 1, %s724_s17  }
  0x19   : > { %p40_p6 = scmp.eq.s32.totalorder %s37_s26, 0  ;;  %p51_p9 = por %p50_p0, %p49_p13 }
  0x1a   : > { %s460_s28 = sshll.u32 %s199_s27, 3  ;;  %s461_s21 = sshll.u32 %s732_s19, 3 }
  0x1b   : > { %s853_s30 = scalar_select %p40_p6, %s724_s17, %s42_s14  }
  0x1c   : > { %s208_s7 = scalar_lea.hbm %s920_s0, %s461_s21  ;;  %s203_s9 = scalar_lea.vmem [#allocation3], %s460_s28 }
  0x1d   : > { %s210_s8 = sshll.u32 %s208_s7, 4  ;;  %s212_s10 = sshll.u32 %s203_s9, 4  ;;  %s211_s8 = int_to_ptr.hbm [resolvable:$true] %s210_s8  ;;  %s213_s10 = int_to_ptr.vmem [resolvable:$true] %s212_s10 }
  0x1e   : > { %p491_p10 = pnand %p500_p4, %p51_p9  ;;  %s200_s11 = scalar_lea.sflag [#allocation4], %s199_s27 }
  0x1f   : > { %221 = sbr.rel (%p822_p7) target bundleno = 202 (0xca), region = 36  ;;  %s863_s12 = sand.u32 (!%p822_p7), 1, %s720_s16  }
  0x20   : > { %493 = dma.hbm_to_vmem [thread:$0]  (!%p491_p10), %s211_s8, 128, %s213_s10, %s200_s11  }
  0x21   : > { %s463_s14 = sshll.u32 (!%p822_p7), %s863_s12, 3  ;;  %s224_s26 = scalar_lea.sflag (!%p822_p7), [#allocation4], %s863_s12 }
  0x22   : > { %s227_s28 = scalar_lea.vmem (!%p822_p7), [#allocation3], %s463_s14 }
  0x24   : > { %703 = dma.done.wait (%p809_p3), %s224_s26, 128  }
  0x25   : > { %705 = vsyncadd (%p809_p3), %s224_s26, 4294967168 }
  0x26   : > { %707 = dma.done.wait (%p803_p1), [#allocation7], 2112  }
  0x27   : > { %709 = vsyncadd (%p803_p1), [#allocation7], 4294965184  ;;  %v312_v0 = vld [vmem:[#allocation8 + $0x78] sm:$0xff]  ;;  %v311_v1 = vld [vmem:[#allocation8 + $0x70] sm:$0xff]  ;;  %vm279_vm0 = vcmask 1041408   ;;  %vm291_vm1 = vcmask 1040384  }
  0x28   : > { %317 = vmatpush.msra.mxu0 %v312_v0  ;;  %v310_v2 = vld [vmem:[#allocation8 + $0x68] sm:$0xff]  ;;  %v309_v3 = vld [vmem:[#allocation8 + $0x60] sm:$0xff]  ;;  %v308_v4 = vld [vmem:[#allocation8 + $0x58] sm:$0xff]  ;;  %s468_s23 = sshll.u32 %s728_s18, 3  ;;  %s262_s6 = scalar_lea.vmem [#allocation9], %s463_s14 }
  0x29   : > { %v307_v5 = vld [vmem:[#allocation8 + $0x50] sm:$0xff]  ;;  %v557_v6 = vld [vmem:[#allocation6] ss:$0 sm:$0xff]  ;;  %v306_v7 = vld [vmem:[#allocation8 + $0x48] sm:$0xff]  ;;  %s350_s27 = scalar_lea.hbm %s924_s4, %s468_s23  ;;  %s352_s7 = sshll.u32 %s262_s6, 4  ;;  %s353_s7 = int_to_ptr.vmem [resolvable:$true] %s352_s7 }
  0x2a   : > { %318 = vmatpush.msra.mxu0 %v311_v1  ;;  %v263_v8 = vld [vmem:[%s227_s28] sm:$0xff]  ;;  %v305_v9 = vld [vmem:[#allocation8 + $0x40] sm:$0xff]  ;;  %v275_v10 = vmul.f32 0.0, %v557_v6  ;;  %v558_v12 = vld [vmem:[#allocation6 + $0x1] ss:$0 sm:$0xff]  ;;  %s354_s8 = sshll.u32 %s350_s27, 4  ;;  %s355_s8 = int_to_ptr.hbm [resolvable:$true] %s354_s8 }
  0x2b   : > { %v276_v11 = vmul.f32 %v557_v6, %v263_v8  ;;  %v304_v13 = vld [vmem:[#allocation8 + $0x38] sm:$0xff]  ;;  %v303_v14 = vld [vmem:[#allocation8 + $0x30] sm:$0xff]  ;;  %v287_v18 = vmul.f32 0.0, %v558_v12  ;;  %v288_v19 = vmul.f32 %v558_v12, %v263_v8  ;;  %v302_v20 = vld [vmem:[#allocation8 + $0x28] sm:$0xff]  ;;  %s339_s9 = scalar_lea.sflag [#allocation5], %s863_s12  ;;  %s664_s18 = sshra.s32 %s355_s8, 4  ;;  %s665_s18 = int_to_ptr.hbm [resolvable:$true] %s664_s18 }
  0x2c   : > { %319 = vmatpush.msra.mxu0 %v310_v2  ;;  %v556_v15 = vld [vmem:[#allocation6 + $0x2] ss:$0 sm:$0xff]  ;;  %v280_v16 = vrot.slane %v275_v10, 6  ;;  %v301_v21 = vld [vmem:[#allocation8 + $0x20] sm:$0xff]  ;;  %v299_v27 = vld [vmem:[#allocation8 + $0x10] sm:$0xff]  ;;  %s666_s10 = scalar_lea.hbm %s665_s18, 8  ;;  %p671_p11 = scmp.lt.s32.totalorder %s665_s18, %s924_s4 }
  0x2d   : > { %v281_v17 = vrot.slane %v276_v11, 6  ;;  %v272_v22 = vmul.f32 %v556_v15, %v263_v8  ;;  %v292_v24 = vrot.slane %v287_v18, 7  ;;  %v293_v25 = vrot.slane %v288_v19, 7  ;;  %v300_v26 = vld [vmem:[#allocation8 + $0x18] sm:$0xff]  ;;  %v298_v30 = vld [vmem:[#allocation8 + $0x8] sm:$0xff]  ;;  %v297_v31 = vld [vmem:[#allocation8] sm:$0xff]  ;;  %p667_p1 = scmp.ne.s32.totalorder %s665_s18, %s666_s10 }
  0x2e   : > { %320 = vmatpush.msra.mxu0 %v309_v3  ;;  %v559_v33 = vld [vmem:[%s923_s3] ss:$0 sm:$0xff]  ;;  %s670_s28 = scalar_lea.hbm %s924_s4, 16 }
  0x2f   : > { %v282_v23 = vsel %vm279_vm0, %v280_v16, %v281_v17  ;;  %v294_v29 = vsel %vm291_vm1, %v292_v24, %v293_v25  ;;  %p668_p3 = pnand %p667_p1, %p843_p2  ;;  %p672_p12 = scmp.lt.s32.totalorder %s670_s28, %s666_s10 }
  0x30   : > { %321 = vmatpush.msra.mxu0 %v308_v4  ;;  %v284_v28 = vadd.f32 %v282_v23, %v272_v22 }
  0x31   : > { %p669_p7 = pneg %p668_p3  ;;  %p673_p13 = por %p672_p12, %p671_p11 }
  0x32   : > { %322 = vmatpush.msra.mxu0 %v307_v5  ;;  %v296_v32 = vadd.f32 %v294_v29, %v284_v28 }
  0x33   : > { %p674_p0 = pnand %p673_p13, %p669_p7 }
  0x34   : > { %323 = vmatpush.msra.mxu0 %v306_v7 }
  0x36   : > { %324 = vmatpush.msra.mxu0 %v305_v9 }
  0x38   : > { %325 = vmatpush.msra.mxu0 %v304_v13 }
  0x3a   : > { %326 = vmatpush.msra.mxu0 %v303_v14 }
  0x3c   : > { %327 = vmatpush.msra.mxu0 %v302_v20 }
  0x3e   : > { %328 = vmatpush.msra.mxu0 %v301_v21 }
  0x40   : > { %329 = vmatpush.msra.mxu0 %v300_v26 }
  0x42   : > { %330 = vmatpush.msra.mxu0 %v299_v27 }
  0x44   : > { %331 = vmatpush.msra.mxu0 %v298_v30 }
  0x46   : > { %332 = vmatpush.msra.mxu0 %v297_v31 }
  0x47   : > { %333 = vmatmul.f32.vlgmr.msra.gmra.mxu0 %v296_v32 }
  0xc4   : > { %v334_v34 = vpop.f32.mrf.mxu0 }
  0xc5   : > { %v335_v35 = vadd.f32 %v559_v33, %v334_v34 }
  0xc7   : > { %337 = vst [vmem:[%s262_s6] sm:$0xff] %v335_v35 }
  0xc8   : > { %677 = shalt.err (!%p674_p0)
}
  0xc9   : > { %481 = dma.vmem_to_hbm [thread:$0]  (%p843_p2), %s353_s7, 128, %s355_s8, %s339_s9  }
  0xca PF: > { %s366_s12 = sand.u32 1, %s716_s15   ;;  %p495_p4 = pnand %p459_p8, %p814_p5 }
  0xcb   : > { %s367_s24 = scalar_lea.sflag [#allocation5], %s366_s12 }
  0xcc   : > { %p496_p6 = pneg %p495_p4 }
  0xce   : > { %711 = dma.done.wait (%p496_p6), %s367_s24, 128  }
  0xcf   : > { %713 = vsyncadd (%p496_p6), %s367_s24, 4294967168  ;;  %s21_s20 = sadd.s32 1, %s736_s20   ;;  %s930_s15 = smov %s720_s16 }
  0xd0   : > { %p18_p9 = scmp.ge.s32.totalorder %s21_s20, 4   ;;  %s931_s16 = smov %s724_s17 }
  0xd1   : > { %s932_s17 = smov %s853_s30  ;;  %s933_s18 = smov %s732_s19 }
  0xd2   : > { %s934_s19 = smov %s936_s13  ;;  %20 = sbr.rel (!%p18_p9) target bundleno = 7 (0x7), region = 93 }
  0xd7   :  { %373 = vsyncpa [#allocation4], 1 }
  0xd8   :  { %375 = vsyncpa [#allocation4 + $0x1], 1 }
  0xd9   :  { %376 = vsyncpa [#allocation7], 1 }
  0xda   :  { %377 = vsyncpa [#allocation5], 1 }
  0xdb   :  { %379 = vsyncpa [#allocation5 + $0x1], 1 }

</bundles_post_ra>
